<compile_context>
chip_gen: v6e
topology: v6e:2x2x1
jax: 0.10.0
libtpu: 0.0.40
codegen_flags: <defaults>
</compile_context>

<pallas_src>
import functools

import jax
import jax.numpy as jnp
from jax.experimental import pallas as pl
from jax.experimental.pallas import tpu as pltpu

LANE = 128     # lane (last-dim) tile width
SUBLANE = 8    # f32 sublane tile height


def _round_up(n, m):
    return ((n + m - 1) // m) * m


def fn_net_kernel(x_ref, w1_ref, b1_ref, w2_ref, b2_ref, w3_ref, b3_ref, o_ref,
                  *, activation_dtype):
    # x_ref: (TB, in_p) in the matmul dtype; weights in matmul dtype; biases f32.
    x = x_ref[...]

    # Layer 1: MXU matmul (f32 accumulate) + f32 bias + tanh in activation dtype.
    h1 = jnp.dot(x, w1_ref[...], preferred_element_type=jnp.float32) + b1_ref[...]
    h1 = jnp.tanh(h1.astype(activation_dtype)).astype(w2_ref.dtype)

    # Layer 2.
    h2 = jnp.dot(h1, w2_ref[...], preferred_element_type=jnp.float32) + b2_ref[...]
    h2 = jnp.tanh(h2.astype(activation_dtype)).astype(w3_ref.dtype)

    # Output layer (no activation).
    out = jnp.dot(h2, w3_ref[...], preferred_element_type=jnp.float32) + b3_ref[...]
    o_ref[...] = out.astype(o_ref.dtype)


def prepare_params(params, *, matmul_dtype=jnp.bfloat16):
    """One-time pad (to lane multiples of 128) + cast of weights/biases.

    Hoisted out of the per-forward path so the weight pad/cast HBM traffic is not
    paid on every call.  Weights are stored (in_dim, out_dim), i.e. the transpose
    of PyTorch nn.Linear's (out, in) layout.  Zero feature padding is exact:
    zero x-columns hit zero weight rows, tanh(0)=0, padded output columns are
    sliced off by the caller.
    """
    in_dim, hid = params["w1"].shape
    out_dim = params["w3"].shape[1]
    in_p, hid_p, out_p = (_round_up(d, LANE) for d in (in_dim, hid, out_dim))

    def pad2(a, rows, cols, dtype):
        a = jnp.asarray(a)
        if a.shape != (rows, cols):
            a = jnp.pad(a, ((0, rows - a.shape[0]), (0, cols - a.shape[1])))
        return a.astype(dtype)

    return {
        "w1": pad2(params["w1"], in_p, hid_p, matmul_dtype),
        "b1": pad2(params["b1"], 1, hid_p, jnp.float32),
        "w2": pad2(params["w2"], hid_p, hid_p, matmul_dtype),
        "b2": pad2(params["b2"], 1, hid_p, jnp.float32),
        "w3": pad2(params["w3"], hid_p, out_p, matmul_dtype),
        "b3": pad2(params["b3"], 1, out_p, jnp.float32),
        "dims": (in_dim, hid, out_dim),
        "matmul_dtype": matmul_dtype,
    }


def fn_net_forward(x, prepared, *, batch_tile=512, activation_dtype=None,
                   out_dtype=jnp.float32):
    """Forward pass of FN_Net.

    x:        (B, input_dim) float32
    prepared: output of prepare_params().  matmul_dtype=bfloat16 is the production
              path on all generations (v5e's MXU is bf16-native; f32 matmuls are a
              test-only path).  activation_dtype defaults to the matmul dtype
              (bf16 tanh on v6e/v7x); pass jnp.float32 on v5e if desired.
    """
    in_dim, hid, out_dim = prepared["dims"]
    matmul_dtype = prepared["matmul_dtype"]
    if activation_dtype is None:
        activation_dtype = matmul_dtype

    B = x.shape[0]
    assert x.shape[1] == in_dim, (x.shape, in_dim)
    in_p = prepared["w1"].shape[0]
    hid_p = prepared["w2"].shape[0]
    out_p = prepared["w3"].shape[1]

    # Batch tiling: choose the tile COUNT first (>= 2 whenever B > 8 so the
    # "parallel" grid axis can shard across v7x's 2 TensorCores and the pipeline
    # actually overlaps), then a sublane-aligned tile size.  Padding past B is at
    # most tb - 1 rows (vs. up to a full batch_tile before).
    n_tiles = max(2, pl.cdiv(B, batch_tile)) if B > SUBLANE else 1
    tb = _round_up(pl.cdiv(B, n_tiles), SUBLANE)
    b_p = n_tiles * tb
    grid = (n_tiles,)

    # Pad/cast x only when needed.  Padded *batch* rows produce garbage after
    # layer 1 (tanh(b1) != 0) but are sliced off below -- never read out_padded
    # directly.
    x_p = x
    if x_p.shape != (b_p, in_p):
        x_p = jnp.pad(x_p, ((0, b_p - B), (0, in_p - in_dim)))
    if x_p.dtype != matmul_dtype:
        x_p = x_p.astype(matmul_dtype)

    w1, b1 = prepared["w1"], prepared["b1"]
    w2, b2 = prepared["w2"], prepared["b2"]
    w3, b3 = prepared["w3"], prepared["b3"]
    operands = (x_p, w1, b1, w2, b2, w3, b3)

    # Weights/biases: constant block index + single buffer -> DMA'd once, stay
    # VMEM-resident across all grid steps at 1x (not 2x) their size.
    # TODO(synk): for hid >= ~4-5k the bf16 weights alone approach v7x's 64 MiB
    # VMEM; add a hidden/output feature grid axis (or an inner emit_pipeline over
    # weight column tiles with an f32 accumulator) instead of full residency.
    def resident(a):
        return pl.BlockSpec(a.shape, lambda i: (0,) * a.ndim,
                            pipeline_mode=pl.Buffered(1))

    # Explicit VMEM budget against the 16/32/32 MiB scoped defaults.
    isz = lambda dt: jnp.dtype(dt).itemsize
    vmem_bytes = (
        2 * tb * in_p * isz(matmul_dtype)                              # x, double-buffered
        + 2 * tb * out_p * isz(out_dtype)                              # out, double-buffered
        + (in_p * hid_p + hid_p * hid_p + hid_p * out_p) * isz(matmul_dtype)  # weights, 1x
        + (2 * hid_p + out_p) * 4                                      # biases (f32)
        + 2 * tb * hid_p * 4                                           # h1/h2 f32 accum
    )
    vmem_limit = int(min(max(int(vmem_bytes * 1.3) + (2 << 20), 16 << 20), 64 << 20))

    cost = pl.CostEstimate(
        flops=2 * b_p * (in_p * hid_p + hid_p * hid_p + hid_p * out_p),
        transcendentals=2 * b_p * hid_p,
        bytes_accessed=sum(int(a.size) * a.dtype.itemsize for a in operands)
        + b_p * out_p * isz(out_dtype),
    )

    kernel = functools.partial(fn_net_kernel, activation_dtype=activation_dtype)

    out_padded = pl.pallas_call(
        kernel,
        out_shape=jax.ShapeDtypeStruct((b_p, out_p), out_dtype),
        grid=grid,
        in_specs=[
            pl.BlockSpec((tb, in_p), lambda i: (i, 0)),   # x: tiled over batch
            resident(w1), resident(b1),
            resident(w2), resident(b2),
            resident(w3), resident(b3),
        ],
        out_specs=pl.BlockSpec((tb, out_p), lambda i: (i, 0)),
        compiler_params=pltpu.CompilerParams(
            dimension_semantics=("parallel",),            # megacore sharding on v7x
            vmem_limit_bytes=vmem_limit,
        ),
        cost_estimate=cost,
    )(*operands)

    # Strip batch and feature padding.
    return out_padded[:B, :out_dim]


def init_params(key, input_dim, output_dim, hid_size):
    """Deterministic init mimicking nn.Linear's uniform(-1/sqrt(fan_in), +1/sqrt(fan_in))."""
    ks = jax.random.split(key, 6)

    def linear(kw, kb, fan_in, fan_out):
        bound = 1.0 / jnp.sqrt(jnp.float32(fan_in))
        w = jax.random.uniform(kw, (fan_in, fan_out), jnp.float32, -bound, bound)
        b = jax.random.uniform(kb, (1, fan_out), jnp.float32, -bound, bound)
        return w, b

    w1, b1 = linear(ks[0], ks[1], input_dim, hid_size)
    w2, b2 = linear(ks[2], ks[3], hid_size, hid_size)
    w3, b3 = linear(ks[4], ks[5], hid_size, output_dim)
    return {"w1": w1, "b1": b1, "w2": w2, "b2": b2, "w3": w3, "b3": b3}


def reference_forward(x, p):
    h1 = jnp.tanh(x @ p["w1"] + p["b1"])
    h2 = jnp.tanh(h1 @ p["w2"] + p["b2"])
    return h2 @ p["w3"] + p["b3"]


if __name__ == "__main__":
    key = jax.random.PRNGKey(0)
    k_x, k_p = jax.random.split(key)

    # Small shapes consistent with the module; default batch_tile=512 with B=64
    # still yields a 2-step grid (>=2 steps whenever B > 8).
    batch, input_dim, hid_size, output_dim = 64, 16, 32, 8
    x = jax.random.normal(k_x, (batch, input_dim), jnp.float32)
    params = init_params(k_p, input_dim, output_dim, hid_size)

    ref = reference_forward(x, params)

    # f32 matmul path (test-only on v5e): tight check.
    prep_f32 = prepare_params(params, matmul_dtype=jnp.float32)
    out_f32 = jax.block_until_ready(fn_net_forward(x, prep_f32, batch_tile=32))
    assert out_f32.shape == (batch, output_dim)
    assert jnp.allclose(out_f32, ref, atol=1e-5, rtol=1e-5)

    # bf16 production path (MXU-native, bf16 tanh): loose check vs f32 ref.
    prep_bf16 = prepare_params(params, matmul_dtype=jnp.bfloat16)
    out_bf16 = jax.block_until_ready(fn_net_forward(x, prep_bf16))
    assert out_bf16.shape == (batch, output_dim)
    assert jnp.allclose(out_bf16, ref, atol=5e-2, rtol=5e-2)

    print("KERNEL_OK")
</pallas_src>

<mosaic_0001>
module attributes {stable_mosaic.version = 11 : i64} {
  func.func @fn_net_kernel(%arg0: i32, %arg1: memref<32x128xf32, #tpu.memory_space<vmem>>, %arg2: memref<128x128xf32, #tpu.memory_space<vmem>>, %arg3: memref<1x128xf32, #tpu.memory_space<vmem>>, %arg4: memref<128x128xf32, #tpu.memory_space<vmem>>, %arg5: memref<1x128xf32, #tpu.memory_space<vmem>>, %arg6: memref<128x128xf32, #tpu.memory_space<vmem>>, %arg7: memref<1x128xf32, #tpu.memory_space<vmem>>, %arg8: memref<32x128xf32, #tpu.memory_space<vmem>>) attributes {dimension_semantics = [#tpu.dimension_semantics<parallel>], iteration_bounds = array<i64: 2>, scalar_prefetch = 0 : i64, scratch_operands = 0 : i64, tpu.core_type = #tpu.core_type<tc>, window_params = [{transform_indices = @transform_0, window_bounds = array<i64: 32, 128>}, {pipeline_mode = #tpu.pipeline_mode<synchronous>, transform_indices = @transform_1, window_bounds = array<i64: 128, 128>}, {pipeline_mode = #tpu.pipeline_mode<synchronous>, transform_indices = @transform_2, window_bounds = array<i64: 1, 128>}, {pipeline_mode = #tpu.pipeline_mode<synchronous>, transform_indices = @transform_3, window_bounds = array<i64: 128, 128>}, {pipeline_mode = #tpu.pipeline_mode<synchronous>, transform_indices = @transform_4, window_bounds = array<i64: 1, 128>}, {pipeline_mode = #tpu.pipeline_mode<synchronous>, transform_indices = @transform_5, window_bounds = array<i64: 128, 128>}, {pipeline_mode = #tpu.pipeline_mode<synchronous>, transform_indices = @transform_6, window_bounds = array<i64: 1, 128>}, {transform_indices = @transform_7, window_bounds = array<i64: 32, 128>}]} {
    %c0 = arith.constant 0 : index
    %c0_0 = arith.constant 0 : index
    %0 = vector.load %arg1[%c0, %c0_0] : memref<32x128xf32, #tpu.memory_space<vmem>>, vector<32x128xf32>
    %c0_1 = arith.constant 0 : index
    %c0_2 = arith.constant 0 : index
    %1 = vector.load %arg2[%c0_1, %c0_2] : memref<128x128xf32, #tpu.memory_space<vmem>>, vector<128x128xf32>
    %cst = arith.constant dense<0.000000e+00> : vector<32x128xf32>
    %2 = tpu.matmul %0, %1, %cst {dimension_numbers = #tpu.dot_dimension_numbers<[1], [0], [0], [1], [0, 0, 1, 1], [], []>} : vector<32x128xf32>, vector<128x128xf32>, vector<32x128xf32> -> vector<32x128xf32>
    %c0_3 = arith.constant 0 : index
    %c0_4 = arith.constant 0 : index
    %3 = vector.load %arg3[%c0_3, %c0_4] : memref<1x128xf32, #tpu.memory_space<vmem>>, vector<1x128xf32>
    %4 = vector.broadcast %3 : vector<1x128xf32> to vector<32x128xf32>
    %5 = arith.addf %2, %4 : vector<32x128xf32>
    %6 = math.tanh %5 : vector<32x128xf32>
    %c0_5 = arith.constant 0 : index
    %c0_6 = arith.constant 0 : index
    %7 = vector.load %arg4[%c0_5, %c0_6] : memref<128x128xf32, #tpu.memory_space<vmem>>, vector<128x128xf32>
    %cst_7 = arith.constant dense<0.000000e+00> : vector<32x128xf32>
    %8 = tpu.matmul %6, %7, %cst_7 {dimension_numbers = #tpu.dot_dimension_numbers<[1], [0], [0], [1], [0, 0, 1, 1], [], []>} : vector<32x128xf32>, vector<128x128xf32>, vector<32x128xf32> -> vector<32x128xf32>
    %c0_8 = arith.constant 0 : index
    %c0_9 = arith.constant 0 : index
    %9 = vector.load %arg5[%c0_8, %c0_9] : memref<1x128xf32, #tpu.memory_space<vmem>>, vector<1x128xf32>
    %10 = vector.broadcast %9 : vector<1x128xf32> to vector<32x128xf32>
    %11 = arith.addf %8, %10 : vector<32x128xf32>
    %12 = math.tanh %11 : vector<32x128xf32>
    %c0_10 = arith.constant 0 : index
    %c0_11 = arith.constant 0 : index
    %13 = vector.load %arg6[%c0_10, %c0_11] : memref<128x128xf32, #tpu.memory_space<vmem>>, vector<128x128xf32>
    %cst_12 = arith.constant dense<0.000000e+00> : vector<32x128xf32>
    %14 = tpu.matmul %12, %13, %cst_12 {dimension_numbers = #tpu.dot_dimension_numbers<[1], [0], [0], [1], [0, 0, 1, 1], [], []>} : vector<32x128xf32>, vector<128x128xf32>, vector<32x128xf32> -> vector<32x128xf32>
    %c0_13 = arith.constant 0 : index
    %c0_14 = arith.constant 0 : index
    %15 = vector.load %arg7[%c0_13, %c0_14] : memref<1x128xf32, #tpu.memory_space<vmem>>, vector<1x128xf32>
    %16 = vector.broadcast %15 : vector<1x128xf32> to vector<32x128xf32>
    %17 = arith.addf %14, %16 : vector<32x128xf32>
    %c0_15 = arith.constant 0 : index
    %c0_16 = arith.constant 0 : index
    %18 = vector.load %arg8[%c0_15, %c0_16] : memref<32x128xf32, #tpu.memory_space<vmem>>, vector<32x128xf32>
    tpu.vector_store %arg8[%c0_15, %c0_16], %17 {strides = array<i32>} : memref<32x128xf32, #tpu.memory_space<vmem>>, vector<32x128xf32>,
    return
  }
  func.func @transform_0(%arg0: i32) -> (i32, i32) {
    %c0_i32 = arith.constant 0 : i32
    %c0_i32_0 = arith.constant 0 : i32
    return %arg0, %c0_i32 : i32, i32
  }
  func.func @transform_1(%arg0: i32) -> (i32, i32) {
    %c0_i32 = arith.constant 0 : i32
    %c0_i32_0 = arith.constant 0 : i32
    %c0_i32_1 = arith.constant 0 : i32
    return %c0_i32, %c0_i32_0 : i32, i32
  }
  func.func @transform_2(%arg0: i32) -> (i32, i32) {
    %c0_i32 = arith.constant 0 : i32
    %c0_i32_0 = arith.constant 0 : i32
    %c0_i32_1 = arith.constant 0 : i32
    return %c0_i32, %c0_i32_0 : i32, i32
  }
  func.func @transform_3(%arg0: i32) -> (i32, i32) {
    %c0_i32 = arith.constant 0 : i32
    %c0_i32_0 = arith.constant 0 : i32
    %c0_i32_1 = arith.constant 0 : i32
    return %c0_i32, %c0_i32_0 : i32, i32
  }
  func.func @transform_4(%arg0: i32) -> (i32, i32) {
    %c0_i32 = arith.constant 0 : i32
    %c0_i32_0 = arith.constant 0 : i32
    %c0_i32_1 = arith.constant 0 : i32
    return %c0_i32, %c0_i32_0 : i32, i32
  }
  func.func @transform_5(%arg0: i32) -> (i32, i32) {
    %c0_i32 = arith.constant 0 : i32
    %c0_i32_0 = arith.constant 0 : i32
    %c0_i32_1 = arith.constant 0 : i32
    return %c0_i32, %c0_i32_0 : i32, i32
  }
  func.func @transform_6(%arg0: i32) -> (i32, i32) {
    %c0_i32 = arith.constant 0 : i32
    %c0_i32_0 = arith.constant 0 : i32
    %c0_i32_1 = arith.constant 0 : i32
    return %c0_i32, %c0_i32_0 : i32, i32
  }
  func.func @transform_7(%arg0: i32) -> (i32, i32) {
    %c0_i32 = arith.constant 0 : i32
    %c0_i32_0 = arith.constant 0 : i32
    return %arg0, %c0_i32 : i32, i32
  }
}

</mosaic_0001>

<bundles_post_ra>
// kernel: tpu_custom_call.1
= control target key start
LH: loop header
LB: loop body
LE: loop exit
PB: predicated region body
PF: predicated region fallthrough
CT: control target
= control target key end

     0   :  { %s1587_s0 = inlined_call_operand.hbm [shape: f32[64,128], index: 0, kind: input, shape index: {}]   ;;  %s1588_s1 = inlined_call_operand.hbm [shape: f32[128,128], index: 1, kind: input, shape index: {}]   ;;  %s1589_s2 = inlined_call_operand.vmem [shape: f32[1,128], index: 2, kind: input, shape index: {}]   ;;  %s1590_s3 = inlined_call_operand.hbm [shape: f32[128,128], index: 3, kind: input, shape index: {}]   ;;  %s1591_s4 = inlined_call_operand.vmem [shape: f32[1,128], index: 4, kind: input, shape index: {}]   ;;  %s1592_s5 = inlined_call_operand.hbm [shape: f32[128,128], index: 5, kind: input, shape index: {}]   ;;  %s1593_s6 = inlined_call_operand.vmem [shape: f32[1,128], index: 6, kind: input, shape index: {}]   ;;  %s1594_s7 = inlined_call_operand.hbm [shape: f32[64,128], index: 7, kind: output, shape index: {}]  }
   0x1   :  { %1601 = sst [smem:[#allocation15_spill]] %s1588_s1 }
   0x2   :  { %12 = vsyncpa [#allocation3], 0 }
   0x3   :  { %14 = vsyncpa [#allocation3 + $0x1], 0 }
   0x4   :  { %15 = vsyncpa [#allocation6], 0 }
   0x5   :  { %16 = vsyncpa [#allocation9], 0 }
   0x6   :  { %17 = vsyncpa [#allocation4], 0 }
   0x7   :  { %19 = vsyncpa [#allocation4 + $0x1], 0  ;;  %s1356_s24 = smov 0   ;;  %s1358_s25 = smov 0  }
   0x8   :  { %s1360_s26 = smov 0   ;;  %s1362_s27 = smov 0  }
   0x9 LB: > { %s1377_s28 = sadd.s32 4294967295, %s1305_s27   ;;  %s799_s29 = sadd.s32 4294967294, %s1305_s27   ;;  %s1305_s27 = sphi %s1362_s27, %s1623_s27   ;;  %s1301_s26 = sphi %s1360_s26, %s1622_s26   ;;  %s1297_s25 = sphi %s1358_s25, %s1621_s25   ;;  %s1293_s24 = sphi %s1356_s24, %s1620_s24  }
   0xa   : > { %p45_p0 = scmp.ne.s32.totalorder %s1297_s25, %s1293_s24  ;;  %p1595_p1 = scmp.eq.s32.totalorder %s1377_s28, 0 }
   0xb   : > { %p195_p2 = scmp.eq.s32.totalorder %s1377_s28, 1  ;;  %p201_p3 = scmp.eq.s32.totalorder %s799_s29, 1 }
   0xc   : > { %p1386_p4 = por %p1595_p1, %p45_p0  ;;  %p800_p5 = scmp.ge.s32.totalorder %s1305_s27, 1 }
   0xd   : > { %p1391_p6 = por %p201_p3, %p45_p0  ;;  %p208_p7 = scmp.lt.s32.totalorder %s1305_s27, 3 }
   0xe   : > { %s1602_s30 = scalar_select %p1386_p4, 1, 0 }
   0xf   : > { %s1603_s8 = scalar_select %p1391_p6, 1, 0 }
  0x10   : > { %p1396_p8 = pnand %p800_p5, %p208_p7  ;;  %s1307_s10 = smov [#allocation5]  }
  0x11   : > { %s220_s11 = sshll.u32 %s1307_s10, 4  ;;  %s1308_s13 = smov [#allocation7]   ;;  %s221_s11 = int_to_ptr.vmem [resolvable:$true] %s220_s11 }
  0x12   : > { %s1604_s9 = scalar_select %p1396_p8, 1, 0 }
  0x13   : > { %p1046_p9 = pneg %p1396_p8  ;;  %s236_s14 = sshll.u32 %s1308_s13, 4  ;;  %s237_s14 = int_to_ptr.vmem [resolvable:$true] %s236_s14 }
  0x14   : > { %s1309_s15 = smov [#allocation8]   ;;  %s1138_s17 = scalar_lea.vmem %s221_s11, 2048 }
  0x15   : > { %p1405_p11 = pnand %p1046_p9, %p1595_p1  ;;  %s252_s16 = sshll.u32 %s1309_s15, 4  ;;  %s253_s16 = int_to_ptr.vmem [resolvable:$true] %s252_s16 }
  0x16   : > { %p1139_p13 = scmp.ne.s32.totalorder %s221_s11, %s1138_s17  ;;  %p1146_p5 = scmp.lt.s32.totalorder %s221_s11, %s221_s11 }
  0x17   : > { %p1129_p12 = pneg %p1405_p11  ;;  %p1147_p7 = scmp.lt.s32.totalorder %s1138_s17, %s1138_s17 }
  0x19   : > { %p1141_p0 = pnand %p1139_p13, %p1129_p12  ;;  %p1148_p9 = por %p1147_p7, %p1146_p5 }
  0x1b   : > { %p1142_p3 = pneg %p1141_p0 }
  0x1d   : > { %p1149_p10 = pnand %p1148_p9, %p1142_p3 }
  0x1f   : > { %1152 = shalt.err (!%p1149_p10)
}
  0x20   : > { %s1596_s18 = smov 128   ;;  %s1597_s19 = smov 8  }
  0x21   : > { %s1606_s1 = sld [smem:[#allocation15_spill]]  ;;  %s1164_s22 = scalar_lea.vmem %s237_s14, 2048 }
  0x22   : > { %p1165_p13 = scmp.ne.s32.totalorder %s237_s14, %s1164_s22  ;;  %p1172_p3 = scmp.lt.s32.totalorder %s237_s14, %s237_s14 }
  0x23   : > { %p1173_p10 = scmp.lt.s32.totalorder %s1164_s22, %s1164_s22 }
  0x24   : > { %p1167_p0 = pnand %p1165_p13, %p1129_p12 }
  0x25   : > { %p1174_p7 = por %p1173_p10, %p1172_p3 }
  0x26   : > { %p1168_p5 = pneg %p1167_p0 }
  0x27   : > { %1049 = dma.hbm_to_vmem [thread:$0]  (!%p1405_p11), %s1606_s1, 2048, %s221_s11, [#allocation6], %s1596_s18, %s1596_s18, %s1597_s19  }
  0x28   : > { %p1175_p9 = pnand %p1174_p7, %p1168_p5 }
  0x2a   : > { %1178 = shalt.err (!%p1175_p9)
}
  0x2b   : > { %1052 = dma.hbm_to_vmem [thread:$0]  (!%p1405_p11), %s1590_s3, 2048, %s237_s14, [#allocation6], %s1596_s18, %s1596_s18, %s1597_s19  }
  0x2c   : > { %s1190_s10 = scalar_lea.vmem %s253_s16, 2048  ;;  %p1198_p3 = scmp.lt.s32.totalorder %s253_s16, %s253_s16 }
  0x2d   : > { %p1191_p1 = scmp.ne.s32.totalorder %s253_s16, %s1190_s10  ;;  %p1199_p5 = scmp.lt.s32.totalorder %s1190_s10, %s1190_s10 }
  0x2f   : > { %p1193_p13 = pnand %p1191_p1, %p1129_p12  ;;  %p1200_p10 = por %p1199_p5, %p1198_p3 }
  0x31   : > { %p1194_p0 = pneg %p1193_p13 }
  0x33   : > { %p1201_p7 = pnand %p1200_p10, %p1194_p0 }
  0x35   : > { %1204 = shalt.err (!%p1201_p7)
}
  0x36   : > { %1055 = dma.hbm_to_vmem [thread:$0]  (!%p1405_p11), %s1592_s5, 2048, %s253_s16, [#allocation9], %s1596_s18, %s1596_s18, %s1597_s19  }
  0x37   : > { %s1445_s14 = sadd.s32 1, %s1305_s27   ;;  %s32_s15 = sadd.s32 1, %s1301_s26 }
  0x38   : > { %s29_s12 = ssub.s32 %s1305_s27, %s1445_s14  ;;  %p39_p12 = scmp.ne.s32.totalorder %s1301_s26, %s1297_s25 }
  0x39   : > { %p30_p1 = scmp.eq.s32.totalorder %s29_s12, 0  ;;  %p40_p9 = scmp.eq.s32.totalorder %s1305_s27, 0 }
  0x3a   : > { %p1067_p13 = scmp.lt.s32.totalorder %s1305_s27, 2  ;;  %p1459_p3 = por %p195_p2, %p39_p12 }
  0x3b   : > { %s1455_s17 = scalar_select %p30_p1, %s1301_s26, %s32_s15  }
  0x3c   : > { %p41_p0 = por %p40_p9, %p39_p12  ;;  %s269_s21 = sand.u32 1, %s1301_s26  }
  0x3d   : > { %s1607_s20 = scalar_select %p1459_p3, 1, 0 }
  0x3e   : > { %s822_s22 = sshll.u32 %s1305_s27, 9  ;;  %s805_s16 = sshll.u32 %s269_s21, 5 }
  0x3f   : > { %s1468_s10 = scalar_lea.hbm %s1587_s0, %s822_s22  ;;  %s273_s11 = scalar_lea.vmem [#allocation2], %s805_s16 }
  0x40   : > { %s280_s13 = sshll.u32 %s273_s11, 4  ;;  %p1470_p11 = pnand %p1067_p13, %p41_p0  ;;  %s1474_s13 = int_to_ptr.vmem [resolvable:$true] %s280_s13 }
  0x41   : > { %s1476_s15 = scalar_lea.sflag [#allocation3], %s269_s21  ;;  %s1205_s18 = scalar_lea.hbm %s1468_s10, 512 }
  0x42   : > { %p1206_p2 = scmp.ne.s32.totalorder %s1468_s10, %s1205_s18  ;;  %p1207_p5 = pneg %p1470_p11 }
  0x43   : > { %s1210_s16 = scalar_lea.hbm %s1587_s0, 1024  ;;  %p1211_p1 = scmp.lt.s32.totalorder %s1468_s10, %s1587_s0 }
  0x44   : > { %p1208_p10 = pnand %p1207_p5, %p1206_p2  ;;  %p1212_p12 = scmp.lt.s32.totalorder %s1210_s16, %s1205_s18 }
  0x46   : > { %p1209_p7 = pneg %p1208_p10  ;;  %p1213_p9 = por %p1212_p12, %p1211_p1 }
  0x48   : > { %p1214_p13 = pnand %p1213_p9, %p1209_p7 }
  0x4a   : > { %1217 = shalt.err (!%p1214_p13)
}
  0x4b   : > { %s1218_s21 = scalar_lea.vmem %s1474_s13, 512  ;;  %s1312_s19 = smov [#allocation2]  }
  0x4c   : > { %p1219_p0 = scmp.ne.s32.totalorder %s1474_s13, %s1218_s21  ;;  %s1223_s1 = sshll.u32 %s1312_s19, 4  ;;  %s1224_s1 = int_to_ptr.vmem [resolvable:$false] %s1223_s1 }
  0x4d   : > { %s1225_s22 = scalar_lea.vmem %s1224_s1, 1024  ;;  %p1226_p10 = scmp.lt.s32.totalorder %s1474_s13, %s1224_s1 }
  0x4e   : > { %p1221_p6 = pnand %p1219_p0, %p1207_p5  ;;  %p1227_p3 = scmp.lt.s32.totalorder %s1225_s22, %s1218_s21 }
  0x50   : > { %p1222_p2 = pneg %p1221_p6  ;;  %p1228_p4 = por %p1227_p3, %p1226_p10 }
  0x52   : > { %p1229_p8 = pnand %p1228_p4, %p1222_p2 }
  0x54   : > { %1232 = shalt.err (!%p1229_p8)
}
  0x55   : > { %s1609_s18 = smov 8   ;;  %s1610_s23 = smov 128  }
  0x56   : > { %1059 = dma.hbm_to_vmem [thread:$0]  (!%p1470_p11), %s1468_s10, 512, %s1474_s13, %s1476_s15, %s1610_s23, %s1610_s23, %s1609_s18  }
  0x57   : > { %p1611_p6 = scmp.ne.s32.totalorder %s1604_s9, 0 }
  0x58   : > { %s1503_s19 = sand.u32 (!%p1611_p6), 1, %s1297_s25   ;;  %p1612_p4 = scmp.ne.s32.totalorder (!%p1611_p6), %s1602_s30, 0 }
  0x59   : > { %292 = sbr.rel (%p1611_p6) target bundleno = 774 (0x306), region = 48  ;;  %s809_s1 = sshll.u32 (!%p1611_p6), %s1503_s19, 5 }
  0x5a   : > { %s295_s16 = scalar_lea.sflag (!%p1611_p6), [#allocation3], %s1503_s19  ;;  %s1509_s12 = scalar_lea.vmem (!%p1611_p6), [#allocation2], %s809_s1 }
  0x5e   : > { %1276 = dma.done.wait (%p1612_p4), %s295_s16, 512  }
  0x5f   : > { %1278 = vsyncadd (%p1612_p4), %s295_s16, 4294966784  ;;  %p1613_p8 = scmp.eq.s32.totalorder %s1377_s28, 0 }
  0x61   : > { %1280 = dma.done.wait (%p1613_p8), [#allocation6], 4096   ;;  %p1614_p3 = pmov %p1613_p8 }
  0x63   : > { %1282 = vsyncadd (%p1614_p3), [#allocation6], 4294963200  ;;  %p1615_p11 = pmov %p1614_p3 }
  0x64   : > { %p1616_p5 = pmov %p1614_p3 }
  0x65   : > { %1284 = dma.done.wait (%p1615_p11), [#allocation9], 2048  }
  0x66   : > { %1286 = vsyncadd (%p1616_p5), [#allocation9], 4294965248  ;;  %v362_v0 = vld [vmem:[#allocation5 + $0x78] sm:$0xff]  ;;  %v361_v1 = vld [vmem:[#allocation5 + $0x70] sm:$0xff]  ;;  %s340_s11 = scalar_lea.vmem [#allocation10], %s809_s1  ;;  %s823_s22 = sshll.u32 %s1377_s28, 9 }
  0x67   : > { %884 = vmatprep.subr.mxu0 %v362_v0  ;;  %v360_v2 = vld [vmem:[#allocation5 + $0x68] sm:$0xff]  ;;  %v359_v3 = vld [vmem:[#allocation5 + $0x60] sm:$0xff]  ;;  %v358_v5 = vld [vmem:[#allocation5 + $0x58] sm:$0xff]  ;;  %s697_s21 = sshll.u32 %s340_s11, 4  ;;  %s1544_s16 = scalar_lea.hbm %s1594_s7, %s823_s22  ;;  %s1539_s21 = int_to_ptr.vmem [resolvable:$true] %s697_s21 }
  0x68   : > { %885 = vmatpush3.msra.mxu0 %v362_v0  ;;  %v343_v4 = vld [vmem:[%s1509_s12] sm:$0xff]  ;;  %v474_v6 = vld [vmem:[#allocation7 + $0x78] sm:$0xff]  ;;  %v473_v7 = vld [vmem:[#allocation7 + $0x70] sm:$0xff]  ;;  %s684_s1 = scalar_lea.sflag [#allocation4], %s1503_s19  ;;  %p1617_p1 = scmp.ne.s32.totalorder %s1607_s20, 0 }
  0x69   : > { %886 = vmatprep.subr.mxu0 %v361_v1  ;;  %916 = vmatprep.mubr.f32.mxu0 %v343_v4  ;;  %v357_v8 = vld [vmem:[#allocation5 + $0x50] sm:$0xff]  ;;  %v472_v9 = vld [vmem:[#allocation7 + $0x68] sm:$0xff]  ;;  %v471_v11 = vld [vmem:[#allocation7 + $0x60] sm:$0xff]  ;;  %s1313_s28 = smov [#allocation10]  }
  0x6a   : > { %887 = vmatpush3.msra.mxu0 %v361_v1  ;;  %922 = vmatprep.subr.mxu1 %v474_v6  ;;  %v356_v10 = vld [vmem:[#allocation5 + $0x48] sm:$0xff]  ;;  %v355_v12 = vld [vmem:[#allocation5 + $0x40] sm:$0xff]  ;;  %v470_v13 = vld [vmem:[#allocation7 + $0x58] sm:$0xff]  ;;  %s1237_s30 = sshll.u32 %s1313_s28, 4  ;;  %s1238_s30 = int_to_ptr.vmem [resolvable:$false] %s1237_s30 }
  0x6b   : > { %888 = vmatprep.subr.mxu0 %v360_v2  ;;  %923 = vmatpush3.msra.mxu1 %v474_v6  ;;  %v354_v14 = vld [vmem:[#allocation5 + $0x38] sm:$0xff]  ;;  %v469_v15 = vld [vmem:[#allocation7 + $0x50] sm:$0xff]  ;;  %v352_v17 = vld [vmem:[#allocation5 + $0x28] sm:$0xff]  ;;  %s1239_s9 = scalar_lea.vmem %s1238_s30, 1024  ;;  %p1240_p13 = scmp.lt.s32.totalorder %s1539_s21, %s1238_s30 }
  0x6c   : > { %889 = vmatpush3.msra.mxu0 %v360_v2  ;;  %924 = vmatprep.subr.mxu1 %v473_v7  ;;  %v353_v16 = vld [vmem:[#allocation5 + $0x30] sm:$0xff]  ;;  %v351_v18 = vld [vmem:[#allocation5 + $0x20] sm:$0xff]  ;;  %v350_v19 = vld [vmem:[#allocation5 + $0x18] sm:$0xff] }
  0x6d   : > { %890 = vmatprep.subr.mxu0 %v359_v3  ;;  %925 = vmatpush3.msra.mxu1 %v473_v7  ;;  %v349_v20 = vld [vmem:[#allocation5 + $0x10] sm:$0xff]  ;;  %v348_v21 = vld [vmem:[#allocation5 + $0x8] sm:$0xff]  ;;  %v347_v22 = vld [vmem:[#allocation5] sm:$0xff] }
  0x6e   : > { %891 = vmatpush3.msra.mxu0 %v359_v3  ;;  %926 = vmatprep.subr.mxu1 %v472_v9  ;;  %v344_v23 = vld [vmem:[%s1509_s12 + $0x8] sm:$0xff]  ;;  %v345_v24 = vld [vmem:[%s1509_s12 + $0x10] sm:$0xff]  ;;  %v346_v25 = vld [vmem:[%s1509_s12 + $0x18] sm:$0xff]  ;;  %s1233_s12 = scalar_lea.vmem %s1539_s21, 512 }
  0x6f   : > { %892 = vmatprep.subr.mxu0 %v358_v5  ;;  %927 = vmatpush3.msra.mxu1 %v472_v9  ;;  %v468_v26 = vld [vmem:[#allocation7 + $0x48] sm:$0xff]  ;;  %v467_v27 = vld [vmem:[#allocation7 + $0x40] sm:$0xff]  ;;  %v466_v28 = vld [vmem:[#allocation7 + $0x38] sm:$0xff]  ;;  %p1234_p7 = scmp.ne.s32.totalorder %s1539_s21, %s1233_s12  ;;  %p1241_p0 = scmp.lt.s32.totalorder %s1239_s9, %s1233_s12 }
  0x70   : > { %893 = vmatpush3.msra.mxu0 %v358_v5  ;;  %928 = vmatprep.subr.mxu1 %v471_v11  ;;  %v465_v29 = vld [vmem:[#allocation7 + $0x30] sm:$0xff]  ;;  %v464_v30 = vld [vmem:[#allocation7 + $0x28] sm:$0xff]  ;;  %v463_v31 = vld [vmem:[#allocation7 + $0x20] sm:$0xff] }
  0x71   : > { %894 = vmatprep.subr.mxu0 %v357_v8  ;;  %929 = vmatpush3.msra.mxu1 %v471_v11  ;;  %v462_v32 = vld [vmem:[#allocation7 + $0x18] sm:$0xff]  ;;  %v461_v33 = vld [vmem:[#allocation7 + $0x10] sm:$0xff]  ;;  %v460_v34 = vld [vmem:[#allocation7 + $0x8] sm:$0xff]  ;;  %p1235_p12 = pnand %p1234_p7, %p1617_p1  ;;  %p1242_p2 = por %p1241_p0, %p1240_p13 }
  0x72   : > { %895 = vmatpush3.msra.mxu0 %v357_v8  ;;  %930 = vmatprep.subr.mxu1 %v470_v13  ;;  %v459_v35 = vld [vmem:[#allocation7] sm:$0xff]  ;;  %v586_v36 = vld [vmem:[#allocation8 + $0x78] sm:$0xff]  ;;  %v585_v37 = vld [vmem:[#allocation8 + $0x70] sm:$0xff] }
  0x73   : > { %896 = vmatprep.subr.mxu0 %v356_v10  ;;  %931 = vmatpush3.msra.mxu1 %v470_v13  ;;  %v584_v38 = vld [vmem:[#allocation8 + $0x68] sm:$0xff]  ;;  %v583_v39 = vld [vmem:[#allocation8 + $0x60] sm:$0xff]  ;;  %v582_v40 = vld [vmem:[#allocation8 + $0x58] sm:$0xff]  ;;  %p1236_p9 = pneg %p1235_p12 }
  0x74   : > { %897 = vmatpush3.msra.mxu0 %v356_v10  ;;  %932 = vmatprep.subr.mxu1 %v469_v15  ;;  %v581_v41 = vld [vmem:[#allocation8 + $0x50] sm:$0xff]  ;;  %v814_v42 = vld [vmem:[%s1589_s2] ss:$0 sm:$0xff]  ;;  %v580_v55 = vld [vmem:[#allocation8 + $0x48] sm:$0xff] }
  0x75   : > { %898 = vmatprep.subr.mxu0 %v355_v12  ;;  %933 = vmatpush3.msra.mxu1 %v469_v15  ;;  %v579_v56 = vld [vmem:[#allocation8 + $0x40] sm:$0xff]  ;;  %v578_v57 = vld [vmem:[#allocation8 + $0x38] sm:$0xff]  ;;  %v577_v58 = vld [vmem:[#allocation8 + $0x30] sm:$0xff]  ;;  %p1243_p10 = pnand %p1242_p2, %p1236_p9 }
  0x76   : > { %899 = vmatpush3.msra.mxu0 %v355_v12  ;;  %934 = vmatprep.subr.mxu1 %v468_v26  ;;  %v576_v59 = vld [vmem:[#allocation8 + $0x28] sm:$0xff]  ;;  %v575_v60 = vld [vmem:[#allocation8 + $0x20] sm:$0xff]  ;;  %v574_v61 = vld [vmem:[#allocation8 + $0x18] sm:$0xff] }
  0x77   : > { %900 = vmatprep.subr.mxu0 %v354_v14  ;;  %935 = vmatpush3.msra.mxu1 %v468_v26  ;;  %v573_v62 = vld [vmem:[#allocation8 + $0x10] sm:$0xff]  ;;  %v572_v63 = vld [vmem:[#allocation8 + $0x8] sm:$0xff]  ;;  %v571_v0 = vld [vmem:[#allocation8] sm:$0xff] }
  0x78   : > { %901 = vmatpush3.msra.mxu0 %v354_v14  ;;  %936 = vmatprep.subr.mxu1 %v467_v27  ;;  %v815_v1 = vld [vmem:[%s1591_s4] ss:$0 sm:$0xff] }
  0x79   : > { %902 = vmatprep.subr.mxu0 %v353_v16  ;;  %937 = vmatpush3.msra.mxu1 %v467_v27  ;;  %v816_v14 = vld [vmem:[%s1593_s6] ss:$0 sm:$0xff] }
  0x7a   : > { %903 = vmatpush3.msra.mxu0 %v353_v16  ;;  %938 = vmatprep.subr.mxu1 %v466_v28 }
  0x7b   : > { %904 = vmatprep.subr.mxu0 %v352_v17  ;;  %939 = vmatpush3.msra.mxu1 %v466_v28 }
  0x7c   : > { %905 = vmatpush3.msra.mxu0 %v352_v17  ;;  %940 = vmatprep.subr.mxu1 %v465_v29 }
  0x7d   : > { %906 = vmatprep.subr.mxu0 %v351_v18  ;;  %941 = vmatpush3.msra.mxu1 %v465_v29 }
  0x7e   : > { %907 = vmatpush3.msra.mxu0 %v351_v18  ;;  %942 = vmatprep.subr.mxu1 %v464_v30 }
  0x7f   : > { %908 = vmatprep.subr.mxu0 %v350_v19  ;;  %943 = vmatpush3.msra.mxu1 %v464_v30 }
  0x80   : > { %909 = vmatpush3.msra.mxu0 %v350_v19  ;;  %944 = vmatprep.subr.mxu1 %v463_v31 }
  0x81   : > { %910 = vmatprep.subr.mxu0 %v349_v20  ;;  %945 = vmatpush3.msra.mxu1 %v463_v31 }
  0x82   : > { %911 = vmatpush3.msra.mxu0 %v349_v20  ;;  %946 = vmatprep.subr.mxu1 %v462_v32 }
  0x83   : > { %912 = vmatprep.subr.mxu0 %v348_v21  ;;  %947 = vmatpush3.msra.mxu1 %v462_v32 }
  0x84   : > { %913 = vmatpush3.msra.mxu0 %v348_v21  ;;  %948 = vmatprep.subr.mxu1 %v461_v33 }
  0x85   : > { %914 = vmatprep.subr.mxu0 %v347_v22  ;;  %949 = vmatpush3.msra.mxu1 %v461_v33 }
  0x86   : > { %915 = vmatpush3.msra.mxu0 %v347_v22  ;;  %950 = vmatprep.subr.mxu1 %v460_v34 }
  0x87   : > { %917 = vmatmul.mubr.f32.vlgmr.msra.gmra.mxu0 %v344_v23  ;;  %951 = vmatpush3.msra.mxu1 %v460_v34 }
  0x88   : > { %919 = vmatprep.mubr.f32.mxu0 %v345_v24  ;;  %952 = vmatprep.subr.mxu1 %v459_v35 }
  0x89   : > { %953 = vmatpush3.msra.mxu1 %v459_v35  ;;  %960 = vmatprep.subr.mxu0 %v586_v36 }
  0x8a   : > { %998 = vmatprep.subr.mxu1 %v586_v36  ;;  %961 = vmatpush3.msra.mxu0 %v586_v36 }
  0x8b   : > { %920 = vmatmul.mubr.f32.gmra.mxu0 %v346_v25  ;;  %962 = vmatprep.subr.mxu0 %v585_v37 }
  0x8c   : > { %963 = vmatpush3.msra.mxu0 %v585_v37 }
  0x8d   : > { %964 = vmatprep.subr.mxu0 %v584_v38 }
  0x8e   : > { %965 = vmatpush3.msra.mxu0 %v584_v38 }
  0x8f   : > { %966 = vmatprep.subr.mxu0 %v583_v39 }
  0x90   : > { %967 = vmatpush3.msra.mxu0 %v583_v39 }
  0x91   : > { %968 = vmatprep.subr.mxu0 %v582_v40 }
  0x92   : > { %969 = vmatpush3.msra.mxu0 %v582_v40 }
  0x93   : > { %970 = vmatprep.subr.mxu0 %v581_v41 }
  0x94   : > { %971 = vmatpush3.msra.mxu0 %v581_v41 }
  0x95   : > { %972 = vmatprep.subr.mxu0 %v580_v55 }
  0x96   : > { %973 = vmatpush3.msra.mxu0 %v580_v55 }
  0x97   : > { %974 = vmatprep.subr.mxu0 %v579_v56 }
  0x98   : > { %975 = vmatpush3.msra.mxu0 %v579_v56 }
  0x99   : > { %976 = vmatprep.subr.mxu0 %v578_v57 }
  0x9a   : > { %977 = vmatpush3.msra.mxu0 %v578_v57 }
  0x9b   : > { %978 = vmatprep.subr.mxu0 %v577_v58 }
  0x9c   : > { %979 = vmatpush3.msra.mxu0 %v577_v58 }
  0x9d   : > { %980 = vmatprep.subr.mxu0 %v576_v59 }
  0x9e   : > { %981 = vmatpush3.msra.mxu0 %v576_v59 }
  0x9f   : > { %982 = vmatprep.subr.mxu0 %v575_v60 }
  0xa0   : > { %983 = vmatpush3.msra.mxu0 %v575_v60 }
  0xa1   : > { %984 = vmatprep.subr.mxu0 %v574_v61 }
  0xa2   : > { %985 = vmatpush3.msra.mxu0 %v574_v61 }
  0xa3   : > { %986 = vmatprep.subr.mxu0 %v573_v62 }
  0xa4   : > { %987 = vmatpush3.msra.mxu0 %v573_v62 }
  0xa5   : > { %988 = vmatprep.subr.mxu0 %v572_v63 }
  0xa6   : > { %989 = vmatpush3.msra.mxu0 %v572_v63 }
  0xa7   : > { %990 = vmatprep.subr.mxu0 %v571_v0 }
  0xa8   : > { %991 = vmatpush3.msra.mxu0 %v571_v0 }
 0x147   : > { %v918_v43 = vpop.f32.mrf.mxu0 }
 0x148   : > { %v442_v44 = vadd.f32 %v918_v43, %v814_v42 }
 0x149   : > { %v436_v45 = vpop.f32.mrf.mxu0 }
 0x14a   : > { %v437_v46 = vadd.f32 %v814_v42, %v436_v45 }
 0x14b   : > { %v921_v47 = vpop.f32.mrf.mxu0 }
 0x14c   : > { %1111 = vtanh.f32 %v437_v46  ;;  %v452_v48 = vadd.f32 %v921_v47, %v814_v42 }
 0x14d   : > { %1113 = vtanh.f32 %v442_v44  ;;  %v446_v49 = vpop.f32.mrf.mxu0 }
 0x14e   : > { %v447_v50 = vadd.f32 %v814_v42, %v446_v49 }
 0x150   : > { %1115 = vtanh.f32 %v447_v50 }
 0x151   : > { %1117 = vtanh.f32 %v452_v48 }
 0x159   : > { %v1112_v51 = vpop.eup %1111 }
 0x15a   : > { %v1114_v52 = vpop.eup %1113  ;;  %954 = vmatprep.mubr.f32.mxu1 %v1112_v51 }
 0x15b   : > { %955 = vmatmul.mubr.f32.vlgmr.msra.gmra.mxu1 %v1114_v52 }
 0x15c   : > { %1014 = vmatpush3.msra.mxu1 %v586_v36 }
 0x15d   : > { %v1116_v53 = vpop.eup %1115  ;;  %999 = vmatprep.subr.mxu1 %v585_v37 }
 0x15e   : > { %v1118_v54 = vpop.eup %1117  ;;  %957 = vmatprep.mubr.f32.mxu1 %v1116_v53  ;;  %1015 = vmatpush3.msra.mxu1 %v585_v37 }
 0x15f   : > { %958 = vmatmul.mubr.f32.gmra.mxu1 %v1118_v54  ;;  %1000 = vmatprep.subr.mxu1 %v584_v38 }
 0x160   : > { %1016 = vmatpush3.msra.mxu1 %v584_v38 }
 0x161   : > { %1001 = vmatprep.subr.mxu1 %v583_v39 }
 0x162   : > { %1017 = vmatpush3.msra.mxu1 %v583_v39 }
 0x163   : > { %1002 = vmatprep.subr.mxu1 %v582_v40 }
 0x164   : > { %1018 = vmatpush3.msra.mxu1 %v582_v40 }
 0x165   : > { %1003 = vmatprep.subr.mxu1 %v581_v41 }
 0x166   : > { %1019 = vmatpush3.msra.mxu1 %v581_v41 }
 0x167   : > { %1004 = vmatprep.subr.mxu1 %v580_v55 }
 0x168   : > { %1020 = vmatpush3.msra.mxu1 %v580_v55 }
 0x169   : > { %1005 = vmatprep.subr.mxu1 %v579_v56 }
 0x16a   : > { %1021 = vmatpush3.msra.mxu1 %v579_v56 }
 0x16b   : > { %1006 = vmatprep.subr.mxu1 %v578_v57 }
 0x16c   : > { %1022 = vmatpush3.msra.mxu1 %v578_v57 }
 0x16d   : > { %1007 = vmatprep.subr.mxu1 %v577_v58 }
 0x16e   : > { %1023 = vmatpush3.msra.mxu1 %v577_v58 }
 0x16f   : > { %1008 = vmatprep.subr.mxu1 %v576_v59 }
 0x170   : > { %1024 = vmatpush3.msra.mxu1 %v576_v59 }
 0x171   : > { %1009 = vmatprep.subr.mxu1 %v575_v60 }
 0x172   : > { %1025 = vmatpush3.msra.mxu1 %v575_v60 }
 0x173   : > { %1010 = vmatprep.subr.mxu1 %v574_v61 }
 0x174   : > { %1026 = vmatpush3.msra.mxu1 %v574_v61 }
 0x175   : > { %1011 = vmatprep.subr.mxu1 %v573_v62 }
 0x176   : > { %1027 = vmatpush3.msra.mxu1 %v573_v62 }
 0x177   : > { %1012 = vmatprep.subr.mxu1 %v572_v63 }
 0x178   : > { %1028 = vmatpush3.msra.mxu1 %v572_v63 }
 0x179   : > { %1013 = vmatprep.subr.mxu1 %v571_v0 }
 0x17a   : > { %1029 = vmatpush3.msra.mxu1 %v571_v0 }
 0x21b   : > { %v956_v2 = vpop.f32.mrf.mxu1 }
 0x21c   : > { %v554_v3 = vadd.f32 %v956_v2, %v815_v1 }
 0x21d   : > { %v548_v4 = vpop.f32.mrf.mxu1 }
 0x21e   : > { %v549_v5 = vadd.f32 %v815_v1, %v548_v4 }
 0x21f   : > { %v959_v6 = vpop.f32.mrf.mxu1 }
 0x220   : > { %1119 = vtanh.f32 %v549_v5  ;;  %v564_v7 = vadd.f32 %v959_v6, %v815_v1 }
 0x221   : > { %1121 = vtanh.f32 %v554_v3  ;;  %v558_v8 = vpop.f32.mrf.mxu1 }
 0x222   : > { %v559_v9 = vadd.f32 %v815_v1, %v558_v8 }
 0x224   : > { %1123 = vtanh.f32 %v559_v9 }
 0x225   : > { %1125 = vtanh.f32 %v564_v7 }
 0x22d   : > { %v1120_v10 = vpop.eup %1119 }
 0x22e   : > { %v1122_v11 = vpop.eup %1121  ;;  %992 = vmatprep.mubr.f32.mxu0 %v1120_v10 }
 0x22f   : > { %993 = vmatmul.mubr.f32.vlgmr.msra.gmra.mxu0 %v1122_v11 }
 0x231   : > { %v1124_v12 = vpop.eup %1123 }
 0x232   : > { %v1126_v13 = vpop.eup %1125  ;;  %995 = vmatprep.mubr.f32.mxu1 %v1124_v12 }
 0x233   : > { %996 = vmatmul.mubr.f32.vlgmr.msra.gmra.mxu1 %v1126_v13 }
 0x2ef   : > { %v994_v15 = vpop.f32.mrf.mxu0 }
 0x2f0   : > { %v666_v16 = vadd.f32 %v994_v15, %v816_v14 }
 0x2f1   : > { %v660_v17 = vpop.f32.mrf.mxu0 }
 0x2f2   : > { %680 = vst [vmem:[%s340_s11 + $0x8] sm:$0xff] %v666_v16  ;;  %v661_v18 = vadd.f32 %v816_v14, %v660_v17 }
 0x2f3   : > { %v997_v19 = vpop.f32.mrf.mxu1 }
 0x2f4   : > { %679 = vst [vmem:[%s340_s11] sm:$0xff] %v661_v18  ;;  %v676_v20 = vadd.f32 %v997_v19, %v816_v14 }
 0x2f5   : > { %v670_v21 = vpop.f32.mrf.mxu1 }
 0x2f6   : > { %682 = vst [vmem:[%s340_s11 + $0x18] sm:$0xff] %v676_v20  ;;  %v671_v22 = vadd.f32 %v816_v14, %v670_v21 }
 0x2f8   : > { %681 = vst [vmem:[%s340_s11 + $0x10] sm:$0xff] %v671_v22 }
 0x2f9   : > { %1246 = shalt.err (!%p1243_p10)
}
 0x2fa   : > { %s1247_s10 = scalar_lea.hbm %s1544_s16, 512  ;;  %s1251_s29 = scalar_lea.hbm %s1594_s7, 1024 }
 0x2fb   : > { %p1248_p6 = scmp.ne.s32.totalorder %s1544_s16, %s1247_s10  ;;  %p1252_p3 = scmp.lt.s32.totalorder %s1544_s16, %s1594_s7 }
 0x2fc   : > { %p1253_p11 = scmp.lt.s32.totalorder %s1251_s29, %s1247_s10 }
 0x2fd   : > { %p1249_p4 = pnand %p1248_p6, %p1617_p1 }
 0x2fe   : > { %p1254_p5 = por %p1253_p11, %p1252_p3 }
 0x2ff   : > { %p1250_p8 = pneg %p1249_p4 }
 0x301   : > { %p1255_p7 = pnand %p1254_p5, %p1250_p8 }
 0x303   : > { %1258 = shalt.err (!%p1255_p7)
}
 0x304   : > { %s1314_s18 = smov 128   ;;  %s1315_s23 = smov 8  }
 0x305   : > { %1044 = dma.vmem_to_hbm [thread:$0]  (%p1617_p1), %s1539_s21, 512, %s1544_s16, %s684_s1, %s1314_s18, %s1314_s18, %s1315_s23  }
 0x306 PF: > { %s712_s12 = sand.u32 1, %s1293_s24   ;;  %p1618_p12 = scmp.ne.s32.totalorder %s1603_s8, 0 }
 0x307   : > { %p1619_p9 = scmp.ge.s32.totalorder %s1305_s27, 2  ;;  %s713_s28 = scalar_lea.sflag [#allocation4], %s712_s12 }
 0x309   : > { %p1061_p13 = pnand %p1619_p9, %p1618_p12 }
 0x30b   : > { %p1062_p0 = pneg %p1061_p13 }
 0x30d   : > { %1288 = dma.done.wait (%p1062_p0), %s713_s28, 512  }
 0x30e   : > { %1290 = vsyncadd (%p1062_p0), %s713_s28, 4294966784  ;;  %p22_p2 = scmp.ge.s32.totalorder %s1445_s14, 4   ;;  %s1620_s24 = smov %s1297_s25 }
 0x30f   : > { %s1621_s25 = smov %s1301_s26  ;;  %s1622_s26 = smov %s1455_s17 }
 0x310   : > { %s1623_s27 = smov %s1445_s14  ;;  %24 = sbr.rel (!%p22_p2) target bundleno = 9 (0x9), region = 105 }
 0x315   :  { %718 = vsyncpa [#allocation3], 1 }
 0x316   :  { %720 = vsyncpa [#allocation3 + $0x1], 1 }
 0x317   :  { %721 = vsyncpa [#allocation6], 1 }
 0x318   :  { %722 = vsyncpa [#allocation9], 1 }
 0x319   :  { %723 = vsyncpa [#allocation4], 1 }
 0x31a   :  { %725 = vsyncpa [#allocation4 + $0x1], 1 }

</bundles_post_ra>
